<compile_context>
chip_gen: v7x
topology: tpu7x:2x2x1
jax: 0.10.0
libtpu: 0.0.40
codegen_flags: <defaults>
</compile_context>

<pallas_src>
import functools

import jax
import jax.numpy as jnp
from jax.experimental import pallas as pl
from jax.experimental.pallas import tpu as pltpu

_LANE = 128
_CHUNK = 512        # rows per in-kernel compute chunk (512x128 f32 = 256 KiB)
_TM_MAX = 16384     # hard cap on rows per streamed block (8 MiB f32)
_NC = 2             # leading "parallel" grid axis: 2-way core split for v7x


def _cdiv(a, b):
    return -(-a // b)


def _pick_tiling(rows, itemsize):
    """Per-generation tile sizing from physical VMEM capacity."""
    try:
        vmem_cap = int(pltpu.get_tpu_info().vmem_capacity_bytes)
    except Exception:  # pragma: no cover - fallback if info is unavailable
        vmem_cap = 64 * 1024 * 1024   # conservative (v7x per-TC)

    # ~1/4 of physical VMEM for the 2 inputs x 2 pipeline buffers
    # => per-input-block budget of vmem_cap / 16.
    per_block = vmem_cap // 16
    cap = per_block // (_LANE * itemsize)
    cap = max(_CHUNK, min(_TM_MAX, (cap // _CHUNK) * _CHUNK))

    if rows >= _CHUNK:
        tm = min(cap, (rows // _CHUNK) * _CHUNK)   # multiple of _CHUNK, <= rows
        chunk = _CHUNK
        acc_rows = 64
    else:
        tm = (rows // 8) * 8                       # caller guarantees rows >= 8
        chunk = tm                                 # single chunk, no loop
        acc_rows = 64 if tm % 64 == 0 else 8

    buffers = 2 * 2 * tm * _LANE * itemsize        # 2 inputs x double buffer
    vmem_limit = min(vmem_cap - (4 << 20), buffers + (8 << 20))
    vmem_limit = max(vmem_limit, 16 << 20)
    return tm, chunk, acc_rows, int(vmem_limit)


def _fold_chunks(x_ref, q_ref, *, chunk, acc_rows, n_chunks, valid_rows):
    """Sum of (q - x)^2 over the first n_chunks*chunk rows of the block,
    folded row-wise into an (acc_rows, 128) f32 partial carried in vregs."""

    def chunk_sse(off, acc):
        x = x_ref[pl.ds(off, chunk), :].astype(jnp.float32)
        q = q_ref[pl.ds(off, chunk), :].astype(jnp.float32)
        d = q - x
        dsq = d * d
        if valid_rows is not None:
            # Select-style mask AFTER the square so NaN/Inf garbage from the
            # un-DMA'd part of a partial block contributes exactly zero.
            r = jax.lax.broadcasted_iota(jnp.int32, (chunk, _LANE), 0) + off
            dsq = jnp.where(r < valid_rows, dsq, 0.0)
        # Row fold: pure cross-vreg VPU adds (no XLU); the single cross-lane
        # reduction happens once, in the wrapper.
        return acc + dsq.reshape(chunk // acc_rows, acc_rows, _LANE).sum(axis=0)

    init = jnp.zeros((acc_rows, _LANE), jnp.float32)
    if n_chunks == 1:
        return chunk_sse(0, init)

    def body(ci, acc):
        off = pl.multiple_of(ci * chunk, chunk)
        return chunk_sse(off, acc)

    return jax.lax.fori_loop(0, n_chunks, body, init)


def _vq_sse_kernel(x_ref, q_ref, o_ref, *, tm, chunk, acc_rows,
                   steps, num_blocks, has_tail, valid_tail):
    c = pl.program_id(0)          # core-split axis ("parallel")
    i = pl.program_id(1)          # streaming/reduction axis ("arbitrary")
    b = c * steps + i             # logical block id (may overflow num_blocks)

    @pl.when(i == 0)
    def _():
        o_ref[...] = jnp.zeros_like(o_ref)

    n_full = num_blocks - 1 if has_tail else num_blocks

    # Hot path: fully valid blocks — no mask, load/sub/mul/add only.
    @pl.when(b < n_full)
    def _():
        o_ref[...] += _fold_chunks(
            x_ref, q_ref, chunk=chunk, acc_rows=acc_rows,
            n_chunks=tm // chunk, valid_rows=None)

    # Tail path: only the single partially-valid block pays for the mask;
    # chunks entirely past valid_tail are skipped statically.
    if has_tail:
        @pl.when(b == num_blocks - 1)
        def _():
            o_ref[...] += _fold_chunks(
                x_ref, q_ref, chunk=chunk, acc_rows=acc_rows,
                n_chunks=_cdiv(valid_tail, chunk), valid_rows=valid_tail)

    # Overflow blocks (b >= num_blocks, from the 2-core split) do no work.


def vector_quantization_loss(inputs, quantized, commitment_cost=1.0):
    """inputs, quantized: [B, C, H, W] (any shape works). Returns f32 loss [1]."""
    assert inputs.shape == quantized.shape
    n = int(inputs.size)
    assert n > 0

    x = inputs.reshape(-1)
    q = quantized.reshape(-1)

    rows = n // _LANE
    if rows < 8:
        # Tiny input (< 1024 elements): not worth a kernel launch.
        d = q.astype(jnp.float32) - x.astype(jnp.float32)
        sse = jnp.sum(d * d)
    else:
        n_main = rows * _LANE
        # Lane-dense (rows, 128) view of the first n_main elements. When
        # n % 128 == 0 (the common case) this is the whole array and the
        # slice+reshape is free; otherwise only the prefix is taken (no
        # full-array pad) and the <128-element remainder is reduced in JAX.
        x2 = x[:n_main].reshape(rows, _LANE)
        q2 = q[:n_main].reshape(rows, _LANE)

        itemsize = jnp.dtype(inputs.dtype).itemsize
        tm, chunk, acc_rows, vmem_limit = _pick_tiling(rows, itemsize)

        num_blocks = _cdiv(rows, tm)
        steps = _cdiv(num_blocks, _NC)
        valid_tail = rows - (num_blocks - 1) * tm     # rows valid in last block
        has_tail = valid_tail != tm

        def in_map(c, i):
            # Clamp so overflow grid steps map to an in-range block; their
            # compute is skipped inside the kernel.
            return (jnp.minimum(c * steps + i, num_blocks - 1), 0)

        kernel = functools.partial(
            _vq_sse_kernel, tm=tm, chunk=chunk, acc_rows=acc_rows,
            steps=steps, num_blocks=num_blocks,
            has_tail=has_tail, valid_tail=valid_tail)

        partials = pl.pallas_call(
            kernel,
            out_shape=jax.ShapeDtypeStruct((_NC * acc_rows, _LANE), jnp.float32),
            grid_spec=pltpu.PrefetchScalarGridSpec(
                num_scalar_prefetch=0,
                grid=(_NC, steps),
                in_specs=[
                    pl.BlockSpec((tm, _LANE), in_map),
                    pl.BlockSpec((tm, _LANE), in_map),
                ],
                out_specs=pl.BlockSpec((acc_rows, _LANE), lambda c, i: (c, 0)),
            ),
            compiler_params=pltpu.CompilerParams(
                dimension_semantics=("parallel", "arbitrary"),
                vmem_limit_bytes=vmem_limit,
            ),
        )(x2, q2)

        # Tiny final cross-lane reduce + the (<128 element) lane remainder.
        sse = jnp.sum(partials)
        if n_main != n:
            dt = q[n_main:].astype(jnp.float32) - x[n_main:].astype(jnp.float32)
            sse = sse + jnp.sum(dt * dt)

    mse = sse / jnp.float32(n)
    e_latent_loss = mse            # forward value of mse(quantized.detach(), inputs)
    q_latent_loss = mse            # forward value of mse(quantized, inputs.detach())
    loss = q_latent_loss + jnp.float32(commitment_cost) * e_latent_loss
    return loss.reshape(1)


def _reference_loss(inputs, quantized, commitment_cost=1.0):
    d = quantized.astype(jnp.float32) - inputs.astype(jnp.float32)
    mse = jnp.mean(d * d)
    return (mse + commitment_cost * mse).reshape(1)


if __name__ == "__main__":
    key = jax.random.PRNGKey(0)
    k1, k2 = jax.random.split(key)

    # Main case: [batch, embedding, height, width] = [2, 4, 16, 16].
    B, C, H, W = 2, 4, 16, 16
    inputs = jax.random.normal(k1, (B, C, H, W), dtype=jnp.float32)
    quantized = inputs + 0.1 * jax.random.normal(k2, (B, C, H, W), dtype=jnp.float32)

    loss = jax.block_until_ready(
        vector_quantization_loss(inputs, quantized, commitment_cost=1.0))
    ref = _reference_loss(inputs, quantized, commitment_cost=1.0)
    assert loss.shape == (1,) and loss.dtype == jnp.float32
    assert jnp.allclose(loss, ref, rtol=1e-5, atol=1e-6), (loss, ref)

    # Multi-block + partially valid tail block: 1100 rows of 128 -> exercises
    # the chunked hot path, the pl.when-gated mask path and the 2-way split.
    xb = jax.random.normal(k1, (5, 5, 44, 128), dtype=jnp.float32)
    qb = xb + 0.05 * jax.random.normal(k2, (5, 5, 44, 128), dtype=jnp.float32)
    loss_b = jax.block_until_ready(
        vector_quantization_loss(xb, qb, commitment_cost=0.5))
    ref_b = _reference_loss(xb, qb, commitment_cost=0.5)
    assert jnp.allclose(loss_b, ref_b, rtol=1e-4, atol=1e-6), (loss_b, ref_b)

    # Ragged element count (1700 = 13*128 + 36): prefix goes through the
    # kernel (masked tail block), the 36-element remainder is reduced in JAX.
    xr = jax.random.normal(k1, (1, 5, 17, 20), dtype=jnp.float32)
    qr = xr + 0.05 * jax.random.normal(k2, (1, 5, 17, 20), dtype=jnp.float32)
    loss_r = jax.block_until_ready(
        vector_quantization_loss(xr, qr, commitment_cost=0.25))
    ref_r = _reference_loss(xr, qr, commitment_cost=0.25)
    assert jnp.allclose(loss_r, ref_r, rtol=1e-5, atol=1e-6), (loss_r, ref_r)

    # Tiny input (< 1024 elements): plain-JAX fallback path.
    xs = jax.random.normal(k1, (1, 3, 8, 16), dtype=jnp.float32)
    qs = xs + 0.05 * jax.random.normal(k2, (1, 3, 8, 16), dtype=jnp.float32)
    loss_s = jax.block_until_ready(
        vector_quantization_loss(xs, qs, commitment_cost=0.25))
    ref_s = _reference_loss(xs, qs, commitment_cost=0.25)
    assert jnp.allclose(loss_s, ref_s, rtol=1e-5, atol=1e-6), (loss_s, ref_s)

    # bf16 inputs stay bf16 through HBM; the f32 cast happens inside the kernel.
    loss_bf = jax.block_until_ready(
        vector_quantization_loss(inputs.astype(jnp.bfloat16),
                                 quantized.astype(jnp.bfloat16),
                                 commitment_cost=1.0))
    ref_bf = _reference_loss(inputs.astype(jnp.bfloat16),
                             quantized.astype(jnp.bfloat16), commitment_cost=1.0)
    assert jnp.allclose(loss_bf, ref_bf, rtol=1e-5, atol=1e-6), (loss_bf, ref_bf)

    print("KERNEL_OK")
</pallas_src>

<mosaic_0001>
module attributes {stable_mosaic.version = 11 : i64} {
  func.func @_vq_sse_kernel(%arg0: i32, %arg1: i32, %arg2: memref<16x128xf32, #tpu.memory_space<vmem>>, %arg3: memref<16x128xf32, #tpu.memory_space<vmem>>, %arg4: memref<8x128xf32, #tpu.memory_space<vmem>>) attributes {dimension_semantics = [#tpu.dimension_semantics<parallel>, #tpu.dimension_semantics<arbitrary>], iteration_bounds = array<i64: 2, 1>, scalar_prefetch = 0 : i64, scratch_operands = 0 : i64, tpu.core_type = #tpu.core_type<tc>, window_params = [{transform_indices = @transform_0, window_bounds = array<i64: 16, 128>}, {transform_indices = @transform_1, window_bounds = array<i64: 16, 128>}, {transform_indices = @transform_2, window_bounds = array<i64: 8, 128>}]} {
    %c1_i32 = arith.constant 1 : i32
    %0 = arith.muli %arg0, %c1_i32 : i32
    %1 = arith.addi %0, %arg1 : i32
    %c0_i32 = arith.constant 0 : i32
    %2 = arith.cmpi eq, %arg1, %c0_i32 : i32
    %3 = arith.extui %2 : i1 to i32
    %c0_i32_0 = arith.constant 0 : i32
    %4 = arith.cmpi ne, %3, %c0_i32_0 : i32
    scf.if %4 {
      %cst = arith.constant 0.000000e+00 : f32
      %8 = vector.broadcast %cst : f32 to vector<8x128xf32>
      %c0 = arith.constant 0 : index
      %c0_3 = arith.constant 0 : index
      %9 = vector.load %arg4[%c0, %c0_3] : memref<8x128xf32, #tpu.memory_space<vmem>>, vector<8x128xf32>
      tpu.vector_store %arg4[%c0, %c0_3], %8 {strides = array<i32>} : memref<8x128xf32, #tpu.memory_space<vmem>>, vector<8x128xf32>,
    } else {
    }
    %c1_i32_1 = arith.constant 1 : i32
    %5 = arith.cmpi slt, %1, %c1_i32_1 : i32
    %6 = arith.extui %5 : i1 to i32
    %c0_i32_2 = arith.constant 0 : i32
    %7 = arith.cmpi ne, %6, %c0_i32_2 : i32
    scf.if %7 {
      %c0 = arith.constant 0 : index
      %c0_3 = arith.constant 0 : index
      %8 = vector.load %arg4[%c0, %c0_3] : memref<8x128xf32, #tpu.memory_space<vmem>>, vector<8x128xf32>
      %cst = arith.constant 0.000000e+00 : f32
      %9 = vector.broadcast %cst : f32 to vector<8x128xf32>
      %c0_4 = arith.constant 0 : index
      %c0_5 = arith.constant 0 : index
      %10 = vector.load %arg2[%c0_4, %c0_5] : memref<16x128xf32, #tpu.memory_space<vmem>>, vector<16x128xf32>
      %c0_6 = arith.constant 0 : index
      %c0_7 = arith.constant 0 : index
      %11 = vector.load %arg3[%c0_6, %c0_7] : memref<16x128xf32, #tpu.memory_space<vmem>>, vector<16x128xf32>
      %12 = arith.subf %11, %10 : vector<16x128xf32>
      %13 = arith.mulf %12, %12 : vector<16x128xf32>
      %14 = vector.shape_cast %13 : vector<16x128xf32> to vector<2x8x128xf32>
      %cst_8 = arith.constant dense<0.000000e+00> : vector<8x128xf32>
      %15 = vector.multi_reduction <add>, %14, %cst_8 [0] : vector<2x8x128xf32> to vector<8x128xf32>
      %16 = arith.addf %9, %15 : vector<8x128xf32>
      %17 = arith.addf %8, %16 : vector<8x128xf32>
      %c0_9 = arith.constant 0 : index
      %c0_10 = arith.constant 0 : index
      %18 = vector.load %arg4[%c0_9, %c0_10] : memref<8x128xf32, #tpu.memory_space<vmem>>, vector<8x128xf32>
      tpu.vector_store %arg4[%c0_9, %c0_10], %17 {strides = array<i32>} : memref<8x128xf32, #tpu.memory_space<vmem>>, vector<8x128xf32>,
    } else {
    }
    return
  }
  func.func @transform_0(%arg0: i32, %arg1: i32) -> (i32, i32) {
    %c1_i32 = arith.constant 1 : i32
    %0 = arith.muli %arg0, %c1_i32 : i32
    %1 = arith.addi %0, %arg1 : i32
    %c0_i32 = arith.constant 0 : i32
    %2 = arith.minsi %1, %c0_i32 : i32
    %c0_i32_0 = arith.constant 0 : i32
    %c0_i32_1 = arith.constant 0 : i32
    return %2, %c0_i32_0 : i32, i32
  }
  func.func @transform_1(%arg0: i32, %arg1: i32) -> (i32, i32) {
    %c1_i32 = arith.constant 1 : i32
    %0 = arith.muli %arg0, %c1_i32 : i32
    %1 = arith.addi %0, %arg1 : i32
    %c0_i32 = arith.constant 0 : i32
    %2 = arith.minsi %1, %c0_i32 : i32
    %c0_i32_0 = arith.constant 0 : i32
    %c0_i32_1 = arith.constant 0 : i32
    return %2, %c0_i32_0 : i32, i32
  }
  func.func @transform_2(%arg0: i32, %arg1: i32) -> (i32, i32) {
    %c0_i32 = arith.constant 0 : i32
    %c0_i32_0 = arith.constant 0 : i32
    return %arg0, %c0_i32 : i32, i32
  }
}

</mosaic_0001>

<bundles_post_ra>
// kernel: tpu_custom_call.1
= control target key start
LH: loop header
LB: loop body
LE: loop exit
PB: predicated region body
PF: predicated region fallthrough
CT: control target
= control target key end

     0   :  { %7 = vsyncpa [#allocation3], 0  ;;  %s881_s0 = inlined_call_operand.hbm [shape: f32[16,128], index: 0, kind: input, shape index: {}]   ;;  %s882_s1 = inlined_call_operand.hbm [shape: f32[16,128], index: 1, kind: input, shape index: {}]   ;;  %s883_s2 = inlined_call_operand.hbm [shape: f32[16,128], index: 2, kind: output, shape index: {}]  }
   0x1   :  { %9 = vsyncpa [#allocation3 + $0x1], 0 }
   0x2   :  { %10 = vsyncpa [#allocation6], 0 }
   0x3   :  { %12 = vsyncpa [#allocation6 + $0x1], 0 }
   0x4   :  { %13 = vsyncpa [#allocation4], 0 }
   0x5   :  { %15 = vsyncpa [#allocation4 + $0x1], 0  ;;  %s683_s9 = smov 0   ;;  %s685_s10 = smov 0  }
   0x6   :  { %s687_s11 = smov 0   ;;  %s689_s12 = smov 0  }
   0x7   :  { %s691_s13 = smov 0   ;;  %s693_s14 = smov 0  }
   0x8   :  { %s695_s15 = smov 0   ;;  %s697_s16 = smov 0  }
   0x9 LB: > { %s378_s17 = sadd.s32 4294967295, %s660_s16   ;;  %s379_s18 = sadd.s32 4294967294, %s660_s16   ;;  %s660_s16 = sphi %s697_s16, %s21_s16   ;;  %s656_s15 = sphi %s695_s15, %s902_s15   ;;  %s652_s14 = sphi %s693_s14, %s901_s14   ;;  %s648_s13 = sphi %s691_s13, %s871_s13   ;;  %s644_s12 = sphi %s689_s12, %s900_s12   ;;  %s640_s11 = sphi %s687_s11, %s899_s11   ;;  %s636_s10 = sphi %s685_s10, %s898_s10   ;;  %s632_s9 = sphi %s683_s9, %s897_s9  }
   0xa   : > { %s33_s19 = sadd.s32 1, %s656_s15  ;;  %p629_p1 = scmp.ne.s32.totalorder %s648_s13, 0 }
   0xb   : > { %p35_p0 = scmp.ge.s32.totalorder %s33_s19, 2  ;;  %p54_p2 = scmp.eq.s32.totalorder %s660_s16, 0 }
   0xc   : > { %p59_p3 = scmp.ne.s32.totalorder %s648_s13, %s644_s12  ;;  %p60_p5 = scmp.eq.s32.totalorder %s378_s17, 0 }
   0xd   : > { %s904_s19 = smov (%p35_p0, %s33_s19), 0  ;;  %p729_p4 = por %p629_p1, %p54_p2 }
   0xe   : > { %p733_p6 = por %p60_p5, %p59_p3  ;;  %s101_s22 = ssub.s32 %s656_s15, %s904_s19 }
   0xf   : > { %p102_p7 = scmp.eq.s32.totalorder %s101_s22, 0  ;;  %s104_s23 = sadd.s32 1, %s640_s11 }
  0x10   : > { %s887_s21 = scalar_select %p733_p6, 1, 0 }
  0x11   : > { %s741_s24 = scalar_select %p102_p7, %s640_s11, %s104_s23  }
  0x12   : > { %p114_p8 = scmp.ne.s32.totalorder %s640_s11, %s636_s10  ;;  %p115_p9 = scmp.eq.s32.totalorder %s378_s17, 1 }
  0x13   : > { %p120_p10 = scmp.ne.s32.totalorder %s636_s10, %s632_s9  ;;  %p121_p11 = scmp.eq.s32.totalorder %s379_s18, 1 }
  0x14   : > { %p747_p12 = por %p115_p9, %p114_p8  ;;  %p416_p1 = scmp.lt.s32.totalorder %s660_s16, 2 }
  0x15   : > { %p752_p0 = por %p121_p11, %p120_p10  ;;  %s662_s27 = smov [#allocation2]  }
  0x16   : > { %s888_s25 = scalar_select %p747_p12, 1, 0 }
  0x17   : > { %s889_s26 = scalar_select %p752_p0, 1, 0 }
  0x18   : > { %s155_s28 = sshll.u32 %s662_s27, 4  ;;  %p759_p2 = pnand %p416_p1, %p729_p4  ;;  %s156_s28 = int_to_ptr.vmem [resolvable:$true] %s155_s28 }
  0x19   : > { %s493_s4 = scalar_lea.hbm %s881_s0, 256 }
  0x1a   : > { %p494_p3 = scmp.ne.s32.totalorder %s881_s0, %s493_s4  ;;  %p495_p5 = pneg %p759_p2 }
  0x1b   : > { %p500_p8 = scmp.lt.u32.totalorder %s493_s4, %s493_s4  ;;  %p502_p9 = scmp.lt.u32.totalorder %s493_s4, %s881_s0 }
  0x1c   : > { %p496_p7 = pnand %p495_p5, %p494_p3 }
  0x1d   : > { %p503_p10 = por %p502_p9, %p500_p8 }
  0x1e   : > { %p497_p4 = pneg %p496_p7 }
  0x20   : > { %p504_p11 = pnand %p503_p10, %p497_p4 }
  0x22   : > { %507 = shalt.err (!%p504_p11)
}
  0x23   : > { %s508_s12 = scalar_lea.vmem %s156_s28, 256  ;;  %s515_s17 = scalar_lea.vmem %s156_s28, 512 }
  0x24   : > { %p509_p1 = scmp.ne.s32.totalorder %s156_s28, %s508_s12  ;;  %p516_p12 = scmp.lt.s32.totalorder %s156_s28, %s156_s28 }
  0x25   : > { %p517_p6 = scmp.lt.s32.totalorder %s515_s17, %s508_s12 }
  0x26   : > { %p511_p13 = pnand %p509_p1, %p495_p5 }
  0x27   : > { %p518_p3 = por %p517_p6, %p516_p12 }
  0x28   : > { %p512_p0 = pneg %p511_p13 }
  0x2a   : > { %p519_p7 = pnand %p518_p3, %p512_p0 }
  0x2c   : > { %522 = shalt.err (!%p519_p7)
}
  0x2d   : > { %s663_s18 = smov 128   ;;  %s664_s20 = smov 8  }
  0x2e   : > { %408 = dma.hbm_to_vmem [thread:$0]  (!%p759_p2), %s881_s0, 256, %s156_s28, [#allocation3], %s663_s18, %s663_s18, %s664_s20  }
  0x2f   : > { %p388_p13 = scmp.ge.s32.totalorder %s660_s16, 1  ;;  %p187_p4 = scmp.lt.s32.totalorder %s660_s16, 3 }
  0x30   : > { %s665_s30 = smov [#allocation5]   ;;  %s523_s6 = scalar_lea.hbm %s882_s1, 256 }
  0x31   : > { %p790_p8 = pnand %p388_p13, %p187_p4  ;;  %s179_s3 = sshll.u32 %s665_s30, 4  ;;  %s180_s3 = int_to_ptr.vmem [resolvable:$true] %s179_s3 }
  0x32   : > { %p524_p6 = scmp.ne.s32.totalorder %s882_s1, %s523_s6  ;;  %p530_p9 = scmp.lt.u32.totalorder %s523_s6, %s523_s6 }
  0x33   : > { %s891_s27 = scalar_select %p790_p8, 1, 0 }
  0x34   : > { %p526_p12 = pnand %p524_p6, %p495_p5  ;;  %p532_p10 = scmp.lt.u32.totalorder %s523_s6, %s882_s1 }
  0x36   : > { %p527_p0 = pneg %p526_p12  ;;  %p533_p11 = por %p532_p10, %p530_p9 }
  0x38   : > { %p534_p1 = pnand %p533_p11, %p527_p0 }
  0x3a   : > { %537 = shalt.err (!%p534_p1)
}
  0x3b   : > { %s538_s17 = scalar_lea.vmem %s180_s3, 256  ;;  %s545_s22 = scalar_lea.vmem %s180_s3, 512 }
  0x3c   : > { %p539_p3 = scmp.ne.s32.totalorder %s180_s3, %s538_s17  ;;  %p546_p4 = scmp.lt.s32.totalorder %s180_s3, %s180_s3 }
  0x3d   : > { %p547_p8 = scmp.lt.s32.totalorder %s545_s22, %s538_s17 }
  0x3e   : > { %p541_p7 = pnand %p539_p3, %p495_p5 }
  0x3f   : > { %p548_p6 = por %p547_p8, %p546_p4 }
  0x40   : > { %p542_p13 = pneg %p541_p7 }
  0x42   : > { %p549_p12 = pnand %p548_p6, %p542_p13 }
  0x44   : > { %552 = shalt.err (!%p549_p12)
}
  0x45   : > { %411 = dma.hbm_to_vmem [thread:$0]  (!%p759_p2), %s882_s1, 256, %s180_s3, [#allocation6], %s663_s18, %s663_s18, %s664_s20  }
  0x46   : > { %p892_p0 = scmp.ne.s32.totalorder %s891_s27, 0 }
  0x47   : > { %s193_s4 = sand.u32 (!%p892_p0), 1, %s648_s13   ;;  %p893_p5 = scmp.ne.s32.totalorder (!%p892_p0), %s887_s21, 0 }
  0x48   : > { %191 = sbr.rel (%p892_p0) target bundleno = 121 (0x79), region = 28  ;;  %s389_s5 = sshll.u32 (!%p892_p0), %s193_s4, 4 }
  0x49   : > { %s194_s6 = scalar_lea.sflag (!%p892_p0), [#allocation3], %s193_s4  ;;  %s197_s7 = scalar_lea.vmem (!%p892_p0), [#allocation2], %s389_s5 }
  0x4f   : > { %618 = dma.done.wait (%p893_p5), %s194_s6, 256  }
  0x50   : > { %620 = vsyncadd (%p893_p5), %s194_s6, 4294967040  ;;  %s203_s29 = scalar_lea.sflag [#allocation6], %s193_s4  ;;  %s206_s8 = scalar_lea.vmem [#allocation5], %s389_s5 }
  0x51   : > { %622 = dma.done.wait (%p893_p5), %s203_s29, 256  }
  0x52   : > { %624 = vsyncadd (%p893_p5), %s203_s29, 4294967040  ;;  %s229_s18 = sand.u32 1, %s636_s10   ;;  %v666_v0 = vmov 0.0   ;;  %p392_p2 = scmp.ge.s32.totalorder %s652_s14, 1 }
  0x53   : > { %s391_s20 = sshll.u32 %s229_s18, 3  ;;  %v251_v1 = vld [vmem:[%s197_s7] sm:$0xff] (!%p392_p2)  ;;  %v252_v2 = vld [vmem:[%s197_s7 + $0x8] sm:$0xff] (!%p392_p2) }
  0x54   : > { %s231_s27 = scalar_lea.vmem [#allocation7], %s391_s20  ;;  %249 = sbr.rel (%p392_p2) target bundleno = 96 (0x60), region = 44  ;;  %v253_v3 = vld [vmem:[%s206_s8] sm:$0xff] (!%p392_p2)  ;;  %v254_v4 = vld [vmem:[%s206_s8 + $0x8] sm:$0xff] (!%p392_p2) }
  0x55   : > { %245 = vst [vmem:[%s231_s27] sm:$0xff] %v666_v0  ;;  %v255_v5 = vsub.f32 (!%p392_p2), %v253_v3, %v251_v1  ;;  %v256_v6 = vsub.f32 (!%p392_p2), %v254_v4, %v252_v2 }
  0x57   : > { %v257_v7 = vmul.f32 (!%p392_p2), %v255_v5, %v255_v5  ;;  %v258_v8 = vmul.f32 (!%p392_p2), %v256_v6, %v256_v6 }
  0x59   : > { %v259_v10 = vadd.f32 (!%p392_p2), %v258_v8, %v257_v7 }
  0x5c   : > { %v250_v9 = vld [vmem:[%s231_s27] sm:$0xff] }
  0x5d   : > { %v261_v11 = vadd.f32 %v259_v10, %v250_v9 }
  0x5f   : > { %262 = vst [vmem:[%s231_s27] sm:$0xff] %v261_v11 }
  0x60 PF: > { %s394_s21 = sshll.u32 %s652_s14, 7  ;;  %s277_s17 = sshll.u32 %s231_s27, 4  ;;  %s278_s17 = int_to_ptr.vmem [resolvable:$true] %s277_s17 }
  0x61   : > { %s834_s12 = scalar_lea.hbm %s883_s2, %s394_s21  ;;  %s264_s22 = scalar_lea.sflag [#allocation4], %s229_s18 }
  0x62   : > { %s553_s23 = scalar_lea.vmem %s278_s17, 128  ;;  %p894_p9 = scmp.ne.s32.totalorder %s888_s25, 0 }
  0x63   : > { %p554_p8 = scmp.ne.s32.totalorder %s278_s17, %s553_s23  ;;  %s667_s30 = smov [#allocation7]  }
  0x64   : > { %s557_s4 = sshll.u32 %s667_s30, 4  ;;  %s558_s4 = int_to_ptr.vmem [resolvable:$false] %s557_s4 }
  0x65   : > { %p555_p10 = pnand %p554_p8, %p894_p9  ;;  %s559_s5 = scalar_lea.vmem %s558_s4, 256 }
  0x66   : > { %p560_p1 = scmp.lt.s32.totalorder %s278_s17, %s558_s4  ;;  %p561_p3 = scmp.lt.s32.totalorder %s559_s5, %s553_s23 }
  0x67   : > { %p556_p11 = pneg %p555_p10 }
  0x68   : > { %p562_p7 = por %p561_p3, %p560_p1 }
  0x6a   : > { %p563_p13 = pnand %p562_p7, %p556_p11 }
  0x6c   : > { %566 = shalt.err (!%p563_p13)
}
  0x6d   : > { %s567_s14 = scalar_lea.hbm %s834_s12, 128  ;;  %s571_s29 = scalar_lea.hbm %s883_s2, 256 }
  0x6e   : > { %p568_p4 = scmp.ne.s32.totalorder %s834_s12, %s567_s14  ;;  %p572_p0 = scmp.lt.u32.totalorder %s834_s12, %s883_s2 }
  0x6f   : > { %p573_p5 = scmp.lt.u32.totalorder %s571_s29, %s567_s14  ;;  %p575_p8 = scmp.lt.u32.totalorder %s567_s14, %s834_s12 }
  0x70   : > { %p569_p6 = pnand %p568_p4, %p894_p9 }
  0x71   : > { %p574_p2 = por %p573_p5, %p572_p0 }
  0x72   : > { %p570_p12 = pneg %p569_p6 }
  0x73   : > { %p576_p10 = por %p575_p8, %p574_p2 }
  0x75   : > { %p577_p11 = pnand %p576_p10, %p570_p12 }
  0x77   : > { %580 = shalt.err (!%p577_p11)
}
  0x78   : > { %403 = dma.vmem_to_hbm [thread:$0]  (%p894_p9), %s278_s17, 128, %s834_s12, %s264_s22  }
  0x79 PF: > { %s289_s20 = sand.u32 1, %s632_s9   ;;  %p895_p1 = scmp.ne.s32.totalorder %s889_s26, 0 }
  0x7a   : > { %p896_p3 = scmp.ge.s32.totalorder %s660_s16, 2  ;;  %s290_s27 = scalar_lea.sflag [#allocation4], %s289_s20 }
  0x7c   : > { %p413_p7 = pnand %p896_p3, %p895_p1 }
  0x7e   : > { %626 = dma.done.wait (!%p413_p7), %s290_s27, 128  }
  0x7f   : > { %628 = vsyncadd (!%p413_p7), %s290_s27, 4294967168  ;;  %s21_s16 = sadd.s32 1, %s660_s16   ;;  %s897_s9 = smov %s636_s10 }
  0x80   : > { %p18_p13 = scmp.ge.s32.totalorder %s21_s16, 4   ;;  %s898_s10 = smov %s640_s11 }
  0x81   : > { %s899_s11 = smov %s741_s24  ;;  %s900_s12 = smov %s648_s13 }
  0x82   : > { %s871_s13 = smov 0   ;;  %s901_s14 = smov %s656_s15 }
  0x83   : > { %s902_s15 = smov %s904_s19  ;;  %20 = sbr.rel (!%p18_p13) target bundleno = 9 (0x9), region = 94 }
  0x8a   :  { %295 = vsyncpa [#allocation3], 1 }
  0x8b   :  { %297 = vsyncpa [#allocation3 + $0x1], 1 }
  0x8c   :  { %298 = vsyncpa [#allocation6], 1 }
  0x8d   :  { %300 = vsyncpa [#allocation6 + $0x1], 1 }
  0x8e   :  { %301 = vsyncpa [#allocation4], 1 }
  0x8f   :  { %303 = vsyncpa [#allocation4 + $0x1], 1 }

</bundles_post_ra>
